<compile_context>
chip_gen: v5e
topology: v5e:2x2
jax: 0.10.0
libtpu: 0.0.40
codegen_flags: <defaults>
</compile_context>

<pallas_src>
import functools
import math

import jax
import jax.numpy as jnp
from jax import lax
from jax.experimental import pallas as pl
from jax.experimental.pallas import tpu as pltpu
import numpy as np

_LN_EPS = 1e-5


def _layernorm(y, w, b, eps=_LN_EPS):
    mu = jnp.mean(y, axis=-1, keepdims=True)
    var = jnp.mean((y - mu) ** 2, axis=-1, keepdims=True)
    return (y - mu) * lax.rsqrt(var + eps) * w + b


# ---------------------------------------------------------------------------
# Capability / sizing helpers
# ---------------------------------------------------------------------------
def _supports_pipeline_mode():
    try:
        pl.BlockSpec((8, 128), lambda i: (0, 0), pipeline_mode=pl.Buffered(1))
        return True
    except Exception:
        return False


_HAS_PIPELINE_MODE = _supports_pipeline_mode()


def _device_kind():
    try:
        return jax.devices()[0].device_kind.lower()
    except Exception:
        return ""


def _vmem_cap_bytes():
    try:
        return int(pltpu.get_tpu_info().vmem_capacity_bytes)
    except Exception:
        return 64 * 2 ** 20


def _vmem_limit(estimate_bytes):
    hi = int(0.85 * _vmem_cap_bytes())
    return int(min(hi, max(32 * 2 ** 20, int(1.5 * estimate_bytes))))


def _pick_tile(n, cap):
    """Largest multiple-of-8 divisor of n that is <= cap (else n itself)."""
    if n <= cap:
        return n
    for t in range(cap - cap % 8, 7, -8):
        if n % t == 0:
            return t
    return n


def _pick_ff_tile(dff, cap=512):
    if dff <= cap:
        return dff
    for t in range((cap // 128) * 128, 127, -128):
        if dff % t == 0:
            return t
    return dff


def _const_spec(arr, grid_rank):
    """Whole array, same block every grid step, single-buffered (constant)."""
    zeros = (0,) * arr.ndim
    imap = (lambda b, i: zeros) if grid_rank == 2 else (lambda b, i, j: zeros)
    if _HAS_PIPELINE_MODE:
        return pl.BlockSpec(arr.shape, imap, pipeline_mode=pl.Buffered(1))
    return pl.BlockSpec(arr.shape, imap)


# ---------------------------------------------------------------------------
# Kernel A: fused QKV projection, tiled over (batch, seq tile).
# ---------------------------------------------------------------------------
def qkv_proj_kernel(x_ref, wqkv_ref, bqkv_ref, qkv_ref):
    acc = jnp.dot(x_ref[...], wqkv_ref[...], preferred_element_type=jnp.float32)
    qkv_ref[...] = (acc + bqkv_ref[...]).astype(qkv_ref.dtype)


# ---------------------------------------------------------------------------
# Kernel B: flash-style causal attention (online softmax over KV tiles) fused
# with out-projection, residual + LN1 and (optionally) FFN + residual + LN2.
# Grid = (B, n_q_tiles, n_kv_tiles); KV axis is the innermost reduction.
# ---------------------------------------------------------------------------
def attn_decoder_kernel(q_ref, k_ref, v_ref, x_ref, wo_ref, bo_ref,
                        ln1w_ref, ln1b_ref, *rest,
                        num_heads, fuse_ffn, exp_dtype):
    if fuse_ffn:
        (w1_ref, b1_ref, w2_ref, b2_ref, ln2w_ref, ln2b_ref,
         o_ref, m_scr, l_scr, acc_scr) = rest
    else:
        o_ref, m_scr, l_scr, acc_scr = rest

    qi = pl.program_id(1)
    ki = pl.program_id(2)

    tile_q, d_model = q_ref.shape
    tile_k = k_ref.shape[0]
    head_dim = d_model // num_heads
    scale = 1.0 / math.sqrt(head_dim)

    @pl.when(ki == 0)
    def _init():
        m_scr[...] = jnp.full_like(m_scr, -jnp.inf)
        l_scr[...] = jnp.zeros_like(l_scr)
        acc_scr[...] = jnp.zeros_like(acc_scr)

    def _flash_block(masked):
        """One online-softmax update per head; only one [Tq,Tk] slab live."""
        q = q_ref[...]
        k = k_ref[...]
        v = v_ref[...]
        if masked:
            # Diagonal tile (qi == ki, tile_q == tile_k): local lower triangle,
            # independent of the absolute tile position.
            row = lax.broadcasted_iota(jnp.int32, (tile_q, tile_k), 0)
            col = lax.broadcasted_iota(jnp.int32, (tile_q, tile_k), 1)
            keep = col <= row
        for h in range(num_heads):
            sl = slice(h * head_dim, (h + 1) * head_dim)
            s = lax.dot_general(
                q[:, sl], k[:, sl], (((1,), (1,)), ((), ())),
                preferred_element_type=jnp.float32) * scale        # [Tq, Tk]
            if masked:
                s = jnp.where(keep, s, -1e30)
            m_prev = m_scr[h]
            m_new = jnp.maximum(m_prev, jnp.max(s, axis=-1, keepdims=True))
            alpha = jnp.exp(m_prev - m_new)                        # f32
            p = jnp.exp((s - m_new).astype(exp_dtype))             # bf16/f32
            l_scr[h] = alpha * l_scr[h] + jnp.sum(
                p, axis=-1, keepdims=True, dtype=jnp.float32)
            acc_scr[h] = alpha * acc_scr[h] + jnp.dot(
                p.astype(jnp.bfloat16), v[:, sl],
                preferred_element_type=jnp.float32)
            m_scr[h] = m_new

    def _epilogue():
        xq = x_ref[...].astype(jnp.float32)                        # residual
        o = jnp.zeros((tile_q, d_model), jnp.float32)
        for h in range(num_heads):
            # Exact reciprocal: epilogue-only, negligible cost (review note).
            inv_l = pl.reciprocal(l_scr[h], approx=False)
            attn_h = (acc_scr[h] * inv_l).astype(jnp.bfloat16)     # [Tq, Dh]
            # Head merge folded into the out-projection (wo as [H, Dh, D]).
            o = o + jnp.dot(attn_h, wo_ref[h],
                            preferred_element_type=jnp.float32)
        h1 = _layernorm(xq + o + bo_ref[...], ln1w_ref[...], ln1b_ref[...])
        if fuse_ffn:
            f = jnp.dot(h1.astype(jnp.bfloat16), w1_ref[...],
                        preferred_element_type=jnp.float32) + b1_ref[...]
            f = jax.nn.gelu(f, approximate=False)                  # exact erf
            f = jnp.dot(f.astype(jnp.bfloat16), w2_ref[...],
                        preferred_element_type=jnp.float32) + b2_ref[...]
            h1 = _layernorm(h1 + f, ln2w_ref[...], ln2b_ref[...])
        o_ref[...] = h1.astype(o_ref.dtype)

    @pl.when(ki < qi)
    def _below_diagonal():
        _flash_block(masked=False)

    @pl.when(ki == qi)
    def _diagonal_and_finalize():
        _flash_block(masked=True)
        _epilogue()
    # Grid steps with ki > qi do nothing (and their K/V block index is clamped,
    # so no DMA is issued for them either).


# ---------------------------------------------------------------------------
# Kernel C (optional): Dff-tiled FFN + residual + LN2 with partial-sum
# accumulation — bounds resident FFN weights on small-VMEM chips (v7x).
# ---------------------------------------------------------------------------
def ffn_ln2_kernel(h1_ref, w1_ref, b1_ref, w2_ref, b2_ref,
                   ln2w_ref, ln2b_ref, o_ref, acc_ref):
    fi = pl.program_id(2)

    @pl.when(fi == 0)
    def _init():
        acc_ref[...] = jnp.zeros_like(acc_ref)

    h1 = h1_ref[...]                                               # [Tr, D] f32
    g = jnp.dot(h1.astype(jnp.bfloat16), w1_ref[...],
                preferred_element_type=jnp.float32) + b1_ref[...]
    g = jax.nn.gelu(g, approximate=False)
    acc_ref[...] += jnp.dot(g.astype(jnp.bfloat16), w2_ref[...],
                            preferred_element_type=jnp.float32)

    @pl.when(fi == pl.num_programs(2) - 1)
    def _finalize():
        f = acc_ref[...] + b2_ref[...]
        o_ref[...] = _layernorm(h1 + f, ln2w_ref[...],
                                ln2b_ref[...]).astype(o_ref.dtype)


# ---------------------------------------------------------------------------
# Wrapper
# ---------------------------------------------------------------------------
def decoder_layer(x, params, num_heads, *, tile_seq=None, tile_ff=None,
                  fuse_ffn=None, softmax_exp_dtype=None):
    """x: [B, S, D] float32. params: dict of pre-transposed weights."""
    B, S, D = x.shape
    H = num_heads
    assert D % H == 0, "d_model must be divisible by num_heads"
    Dh = D // H
    Dff = params["w1_t"].shape[1]
    assert D % 128 == 0, (
        "d_model must be a multiple of 128 so q/k/v can be sliced straight "
        "out of the fused [B, S, 3*D] QKV slab with lane-aligned BlockSpecs")

    kind = _device_kind()
    small_vmem = ("v7" in kind) or ("7x" in kind)          # v7x: 64 MiB / core
    if softmax_exp_dtype is None:
        # bf16 EUP exp exists on v6e / v7x; keep f32 elsewhere (v5e, v4, ...).
        softmax_exp_dtype = (jnp.bfloat16
                             if ("v6" in kind or "v7" in kind or "7x" in kind)
                             else jnp.float32)

    tile = tile_seq or _pick_tile(S, 256)
    assert S % tile == 0, "sequence length must be divisible by the seq tile"
    assert tile == S or tile % 8 == 0, "seq tile must be a multiple of 8"
    n_tiles = S // tile

    wqkv, bqkv = params["wqkv_t"], params["bqkv"]
    wo, bo = params["wo_t"], params["bo"]
    ln1w, ln1b = params["ln1w"], params["ln1b"]
    w1, b1 = params["w1_t"], params["b1"]
    w2, b2 = params["w2_t"], params["b2"]
    ln2w, ln2b = params["ln2w"], params["ln2b"]

    # Head-merge folded into the out-projection: wo as [H, Dh, D] (free reshape).
    wo_hdd = wo.reshape(H, Dh, D)

    # Fuse the FFN into the attention epilogue only while its resident bf16
    # weights stay well inside the (generation-dependent) VMEM budget.
    if fuse_ffn is None:
        fuse_ffn = (wo.size + w1.size + w2.size) * 2 < 0.4 * _vmem_cap_bytes()

    x_bf = x.astype(jnp.bfloat16)

    # ---- Kernel A: fused QKV projection -------------------------------------
    tile_a = _pick_tile(S, 256 if small_vmem else 512)
    est_a = (2 * tile_a * D * 2 + wqkv.size * 2 + 8 * 3 * D * 4
             + 2 * tile_a * 3 * D * 2 + tile_a * 3 * D * 4)
    qkv = pl.pallas_call(
        qkv_proj_kernel,
        out_shape=jax.ShapeDtypeStruct((B, S, 3 * D), jnp.bfloat16),
        grid=(B, S // tile_a),
        in_specs=[
            pl.BlockSpec((None, tile_a, D), lambda b, i: (b, i, 0)),
            _const_spec(wqkv, 2),
            _const_spec(bqkv, 2),
        ],
        out_specs=pl.BlockSpec((None, tile_a, 3 * D), lambda b, i: (b, i, 0)),
        compiler_params=pltpu.CompilerParams(
            dimension_semantics=("parallel", "parallel"),
            vmem_limit_bytes=_vmem_limit(est_a)),
    )(x_bf, wqkv, bqkv)

    # ---- Kernel B: flash attention + out-proj + LN1 (+ FFN + LN2) -----------
    q_spec = pl.BlockSpec((None, tile, D), lambda b, i, j: (b, i, 0))
    kv_kwargs = ({"pipeline_mode": pl.Buffered(3)}
                 if (_HAS_PIPELINE_MODE and n_tiles >= 3) else {})
    # K/V block index clamped to the causal lower triangle: tiles above the
    # diagonal repeat the previous block index, so no DMA is issued for them.
    k_spec = pl.BlockSpec((None, tile, D),
                          lambda b, i, j: (b, jnp.minimum(i, j), 1), **kv_kwargs)
    v_spec = pl.BlockSpec((None, tile, D),
                          lambda b, i, j: (b, jnp.minimum(i, j), 2), **kv_kwargs)
    x_spec = pl.BlockSpec((None, tile, D), lambda b, i, j: (b, i, 0))
    o_spec = pl.BlockSpec((None, tile, D), lambda b, i, j: (b, i, 0))

    kv_bufs = 3 if kv_kwargs else 2
    pad_dh = -(-Dh // 128) * 128
    scratch_bytes = (2 * H * tile * 128 + H * tile * pad_dh) * 4   # (8,128) pad
    w_resident = wo.size * 2 + ((w1.size + w2.size) * 2 if fuse_ffn else 0)
    small_param_bytes = 10 * 8 * max(D, Dff) * 4
    act_bytes = (2 * tile * D * 2                    # q tile
                 + 2 * kv_bufs * tile * D * 2        # k + v tiles
                 + 2 * tile * D * 4                  # x residual tile
                 + 2 * tile * D * 4                  # f32 output tile
                 + 4 * tile * tile * 4               # live score/prob slabs
                 + (tile * Dff * 4 if fuse_ffn else 0))
    est_b = w_resident + small_param_bytes + scratch_bytes + act_bytes

    in_specs = [q_spec, k_spec, v_spec, x_spec,
                _const_spec(wo_hdd, 3), _const_spec(bo, 3),
                _const_spec(ln1w, 3), _const_spec(ln1b, 3)]
    args = [qkv, qkv, qkv, x, wo_hdd, bo, ln1w, ln1b]
    if fuse_ffn:
        in_specs += [_const_spec(w1, 3), _const_spec(b1, 3),
                     _const_spec(w2, 3), _const_spec(b2, 3),
                     _const_spec(ln2w, 3), _const_spec(ln2b, 3)]
        args += [w1, b1, w2, b2, ln2w, ln2b]

    kernel = functools.partial(attn_decoder_kernel, num_heads=H,
                               fuse_ffn=fuse_ffn, exp_dtype=softmax_exp_dtype)
    h_or_out = pl.pallas_call(
        kernel,
        out_shape=jax.ShapeDtypeStruct((B, S, D), jnp.float32),
        grid=(B, n_tiles, n_tiles),
        in_specs=in_specs,
        out_specs=o_spec,
        scratch_shapes=[
            pltpu.VMEM((H, tile, 1), jnp.float32),    # running max
            pltpu.VMEM((H, tile, 1), jnp.float32),    # running denominator
            pltpu.VMEM((H, tile, Dh), jnp.float32),   # running numerator
        ],
        compiler_params=pltpu.CompilerParams(
            dimension_semantics=("parallel", "parallel", "arbitrary"),
            vmem_limit_bytes=_vmem_limit(est_b)),
    )(*args)

    if fuse_ffn:
        return h_or_out

    # ---- Kernel C: Dff-tiled FFN + residual + LN2 ----------------------------
    h1 = h_or_out
    tff = tile_ff or _pick_ff_tile(Dff)
    assert Dff % tff == 0 and (tff == Dff or tff % 128 == 0), \
        "d_ff tile must divide d_ff and be a multiple of 128 (or all of d_ff)"
    tile_r = _pick_tile(S, 256 if small_vmem else 512)
    est_c = (2 * 2 * tile_r * D * 4 + 2 * 2 * D * tff * 2 + tile_r * D * 4
             + 2 * tile_r * tff * 4 + 8 * (D + tff) * 4 * 4)
    out = pl.pallas_call(
        ffn_ln2_kernel,
        out_shape=jax.ShapeDtypeStruct((B, S, D), jnp.float32),
        grid=(B, S // tile_r, Dff // tff),
        in_specs=[
            pl.BlockSpec((None, tile_r, D), lambda b, i, f: (b, i, 0)),
            pl.BlockSpec((D, tff), lambda b, i, f: (0, f)),
            pl.BlockSpec((1, tff), lambda b, i, f: (0, f)),
            pl.BlockSpec((tff, D), lambda b, i, f: (f, 0)),
            _const_spec(b2, 3),
            _const_spec(ln2w, 3), _const_spec(ln2b, 3),
        ],
        out_specs=pl.BlockSpec((None, tile_r, D), lambda b, i, f: (b, i, 0)),
        scratch_shapes=[pltpu.VMEM((tile_r, D), jnp.float32)],
        compiler_params=pltpu.CompilerParams(
            dimension_semantics=("parallel", "parallel", "arbitrary"),
            vmem_limit_bytes=_vmem_limit(est_c)),
    )(h1, w1, b1, w2, b2, ln2w, ln2b)
    return out


# ---------------------------------------------------------------------------
# Parameters & pure-JAX reference
# ---------------------------------------------------------------------------
def make_params(key, d_model, d_ff):
    """Deterministic synthetic parameters.  Linear weights are pre-transposed
    (kernels compute x @ W) and stored in bf16 (MXU-native, halves DMA/VMEM)."""
    ks = jax.random.split(key, 8)
    sd = 0.02
    in_proj_w = jax.random.normal(ks[0], (3 * d_model, d_model), jnp.float32) * sd
    in_proj_b = jax.random.normal(ks[1], (3 * d_model,), jnp.float32) * sd
    out_proj_w = jax.random.normal(ks[2], (d_model, d_model), jnp.float32) * sd
    out_proj_b = jax.random.normal(ks[3], (d_model,), jnp.float32) * sd
    lin1_w = jax.random.normal(ks[4], (d_ff, d_model), jnp.float32) * sd
    lin1_b = jax.random.normal(ks[5], (d_ff,), jnp.float32) * sd
    lin2_w = jax.random.normal(ks[6], (d_model, d_ff), jnp.float32) * sd
    lin2_b = jax.random.normal(ks[7], (d_model,), jnp.float32) * sd
    return {
        "wqkv_t": in_proj_w.T.astype(jnp.bfloat16),    # [D, 3D]
        "bqkv": in_proj_b.reshape(1, -1),              # [1, 3D] f32
        "wo_t": out_proj_w.T.astype(jnp.bfloat16),     # [D, D]
        "bo": out_proj_b.reshape(1, -1),               # [1, D]  f32
        "ln1w": jnp.ones((1, d_model), jnp.float32),
        "ln1b": jnp.zeros((1, d_model), jnp.float32),
        "w1_t": lin1_w.T.astype(jnp.bfloat16),         # [D, Dff]
        "b1": lin1_b.reshape(1, -1),                   # [1, Dff] f32
        "w2_t": lin2_w.T.astype(jnp.bfloat16),         # [Dff, D]
        "b2": lin2_b.reshape(1, -1),                   # [1, D]  f32
        "ln2w": jnp.ones((1, d_model), jnp.float32),
        "ln2b": jnp.zeros((1, d_model), jnp.float32),
    }


def decoder_layer_ref(x, params, num_heads):
    """Pure-JAX f32 reference of the same forward pass (for verification)."""
    B, S, D = x.shape
    Dh = D // num_heads
    wqkv = params["wqkv_t"].astype(jnp.float32)
    wo = params["wo_t"].astype(jnp.float32)
    w1 = params["w1_t"].astype(jnp.float32)
    w2 = params["w2_t"].astype(jnp.float32)

    qkv = x @ wqkv + params["bqkv"]
    q, k, v = qkv[..., :D], qkv[..., D:2 * D], qkv[..., 2 * D:]

    def split_heads(t):
        return t.reshape(B, S, num_heads, Dh).transpose(0, 2, 1, 3)

    q, k, v = split_heads(q), split_heads(k), split_heads(v)
    s = jnp.einsum("bhqd,bhkd->bhqk", q, k) / math.sqrt(Dh)
    mask = jnp.tril(jnp.ones((S, S), bool))
    s = jnp.where(mask, s, -1e30)
    p = jax.nn.softmax(s, axis=-1)
    attn = jnp.einsum("bhqk,bhkd->bhqd", p, v).transpose(0, 2, 1, 3).reshape(B, S, D)
    attn = attn @ wo + params["bo"]

    def ln(y, w, b, eps=_LN_EPS):
        mu = jnp.mean(y, -1, keepdims=True)
        var = jnp.mean((y - mu) ** 2, -1, keepdims=True)
        return (y - mu) / jnp.sqrt(var + eps) * w + b

    h1 = ln(x + attn, params["ln1w"], params["ln1b"])
    f = jax.nn.gelu(h1 @ w1 + params["b1"], approximate=False)
    f = f @ w2 + params["b2"]
    return ln(h1 + f, params["ln2w"], params["ln2b"])


if __name__ == "__main__":
    B, S, d_model, d_ff, num_heads = 2, 16, 128, 256, 4
    key = jax.random.PRNGKey(0)
    kx, kp = jax.random.split(key)
    x = jax.random.normal(kx, (B, S, d_model), jnp.float32)
    params = make_params(kp, d_model, d_ff)

    ref = decoder_layer_ref(x, params, num_heads)

    # Fused-epilogue path; tile_seq=8 gives two seq tiles so the causal-clamped
    # K/V DMAs, the skipped upper-triangle steps and the diagonal-only mask are
    # all exercised.  softmax exp dtype is chosen from the device generation.
    out = jax.block_until_ready(decoder_layer(x, params, num_heads, tile_seq=8))
    np.testing.assert_allclose(np.asarray(out), np.asarray(ref),
                               rtol=2e-2, atol=2e-2)

    # Split-FFN path (Dff-tiled partial sums, as used when resident weights
    # would not fit v7x VMEM), with f32 softmax probabilities.
    out2 = jax.block_until_ready(
        decoder_layer(x, params, num_heads, tile_seq=8, fuse_ffn=False,
                      tile_ff=128, softmax_exp_dtype=jnp.float32))
    np.testing.assert_allclose(np.asarray(out2), np.asarray(ref),
                               rtol=2e-2, atol=2e-2)

    print("KERNEL_OK")
</pallas_src>

<mosaic_0001>
module attributes {stable_mosaic.version = 11 : i64} {
  func.func @qkv_proj_kernel(%arg0: i32, %arg1: i32, %arg2: memref<1x16x128xbf16, #tpu.memory_space<vmem>>, %arg3: memref<128x384xbf16, #tpu.memory_space<vmem>>, %arg4: memref<1x384xf32, #tpu.memory_space<vmem>>, %arg5: memref<1x16x384xbf16, #tpu.memory_space<vmem>>) attributes {dimension_semantics = [#tpu.dimension_semantics<parallel>, #tpu.dimension_semantics<parallel>], iteration_bounds = array<i64: 2, 1>, scalar_prefetch = 0 : i64, scratch_operands = 0 : i64, tpu.core_type = #tpu.core_type<tc>, window_params = [{transform_indices = @transform_0, window_bounds = array<i64: 1, 16, 128>}, {pipeline_mode = #tpu.pipeline_mode<synchronous>, transform_indices = @transform_1, window_bounds = array<i64: 128, 384>}, {pipeline_mode = #tpu.pipeline_mode<synchronous>, transform_indices = @transform_2, window_bounds = array<i64: 1, 384>}, {transform_indices = @transform_3, window_bounds = array<i64: 1, 16, 384>}]} {
    %c0 = arith.constant 0 : index
    %c0_0 = arith.constant 0 : index
    %c0_1 = arith.constant 0 : index
    %0 = vector.load %arg2[%c0, %c0_0, %c0_1] : memref<1x16x128xbf16, #tpu.memory_space<vmem>>, vector<1x16x128xbf16>
    %1 = vector.shape_cast %0 : vector<1x16x128xbf16> to vector<16x128xbf16>
    %c0_2 = arith.constant 0 : index
    %c0_3 = arith.constant 0 : index
    %2 = vector.load %arg3[%c0_2, %c0_3] : memref<128x384xbf16, #tpu.memory_space<vmem>>, vector<128x384xbf16>
    %cst = arith.constant dense<0.000000e+00> : vector<16x384xf32>
    %3 = tpu.matmul %1, %2, %cst {dimension_numbers = #tpu.dot_dimension_numbers<[1], [0], [0], [1], [0, 0, 1, 1], [], []>} : vector<16x128xbf16>, vector<128x384xbf16>, vector<16x384xf32> -> vector<16x384xf32>
    %c0_4 = arith.constant 0 : index
    %c0_5 = arith.constant 0 : index
    %4 = vector.load %arg4[%c0_4, %c0_5] : memref<1x384xf32, #tpu.memory_space<vmem>>, vector<1x384xf32>
    %5 = vector.broadcast %4 : vector<1x384xf32> to vector<16x384xf32>
    %6 = arith.addf %3, %5 : vector<16x384xf32>
    %7 = arith.truncf %6 : vector<16x384xf32> to vector<16x384xbf16>
    %c0_6 = arith.constant 0 : index
    %c0_7 = arith.constant 0 : index
    %c0_8 = arith.constant 0 : index
    %8 = vector.load %arg5[%c0_6, %c0_7, %c0_8] : memref<1x16x384xbf16, #tpu.memory_space<vmem>>, vector<1x16x384xbf16>
    %9 = vector.shape_cast %8 : vector<1x16x384xbf16> to vector<16x384xbf16>
    %10 = vector.shape_cast %7 : vector<16x384xbf16> to vector<1x16x384xbf16>
    tpu.vector_store %arg5[%c0_6, %c0_7, %c0_8], %10 {strides = array<i32>} : memref<1x16x384xbf16, #tpu.memory_space<vmem>>, vector<1x16x384xbf16>,
    return
  }
  func.func @transform_0(%arg0: i32, %arg1: i32) -> (i32, i32, i32) {
    %c0_i32 = arith.constant 0 : i32
    %c0_i32_0 = arith.constant 0 : i32
    return %arg0, %arg1, %c0_i32 : i32, i32, i32
  }
  func.func @transform_1(%arg0: i32, %arg1: i32) -> (i32, i32) {
    %c0_i32 = arith.constant 0 : i32
    %c0_i32_0 = arith.constant 0 : i32
    %c0_i32_1 = arith.constant 0 : i32
    return %c0_i32, %c0_i32_0 : i32, i32
  }
  func.func @transform_2(%arg0: i32, %arg1: i32) -> (i32, i32) {
    %c0_i32 = arith.constant 0 : i32
    %c0_i32_0 = arith.constant 0 : i32
    %c0_i32_1 = arith.constant 0 : i32
    return %c0_i32, %c0_i32_0 : i32, i32
  }
  func.func @transform_3(%arg0: i32, %arg1: i32) -> (i32, i32, i32) {
    %c0_i32 = arith.constant 0 : i32
    %c0_i32_0 = arith.constant 0 : i32
    return %arg0, %arg1, %c0_i32 : i32, i32, i32
  }
}

</mosaic_0001>

<bundles_post_ra>
// kernel: tpu_custom_call.1
= control target key start
LH: loop header
LB: loop body
LE: loop exit
PB: predicated region body
PF: predicated region fallthrough
CT: control target
= control target key end

     0   :  { %s1190_s0 = inlined_call_operand.hbm [shape: bf16[2,16,128], index: 0, kind: input, shape index: {}]   ;;  %s1191_s1 = inlined_call_operand.hbm [shape: bf16[128,384], index: 1, kind: input, shape index: {}]   ;;  %s1192_s2 = inlined_call_operand.hbm [shape: f32[1,384], index: 2, kind: input, shape index: {}]   ;;  %s1193_s3 = inlined_call_operand.hbm [shape: bf16[2,16,384], index: 3, kind: output, shape index: {}]  }
   0x1   :  { %1194 = sst [smem:[#allocation12_spill]] %s1191_s1 }
   0x2   :  { %8 = vsyncpa [#allocation3], 0 }
   0x3   :  { %10 = vsyncpa [#allocation3 + $0x1], 0 }
   0x4   :  { %11 = vsyncpa [#allocation6], 0 }
   0x5   :  { %12 = vsyncpa [#allocation4], 0 }
   0x6   :  { %14 = vsyncpa [#allocation4 + $0x1], 0  ;;  %s1032_s12 = smov 0   ;;  %s1034_s13 = smov 0  }
   0x7   :  { %s1036_s14 = smov 0   ;;  %s1038_s15 = smov 0  }
   0x8   :  { %s1040_s16 = smov 0   ;;  %s1042_s17 = smov 0  }
   0x9 LB: > { %s593_s18 = sadd.s32 4294967295, %s1002_s17   ;;  %s594_s19 = sadd.s32 4294967294, %s1002_s17   ;;  %s1002_s17 = sphi %s1042_s17, %s20_s17   ;;  %s998_s16 = sphi %s1040_s16, %s1207_s16   ;;  %s994_s15 = sphi %s1038_s15, %s1206_s15   ;;  %s990_s14 = sphi %s1036_s14, %s1205_s14   ;;  %s986_s13 = sphi %s1034_s13, %s1204_s13   ;;  %s982_s12 = sphi %s1032_s12, %s1203_s12  }
   0xa   : > { %p54_p0 = scmp.ne.s32.totalorder %s986_s13, %s982_s12  ;;  %p1066_p1 = scmp.eq.s32.totalorder %s593_s18, 0 }
   0xb   : > { %p1070_p2 = scmp.eq.s32.totalorder %s593_s18, 1  ;;  %p128_p3 = scmp.eq.s32.totalorder %s594_s19, 1 }
   0xc   : > { %p1076_p4 = por %p1066_p1, %p54_p0  ;;  %p595_p5 = scmp.ge.s32.totalorder %s1002_s17, 1 }
   0xd   : > { %p1081_p6 = por %p128_p3, %p54_p0  ;;  %p135_p7 = scmp.lt.s32.totalorder %s1002_s17, 3 }
   0xe   : > { %s1199_s1 = sld [smem:[#allocation12_spill]]  ;;  %s1004_s28 = smov [#allocation5]  }
   0xf   : > { %p1089_p8 = pnand %p595_p5, %p135_p7  ;;  %s148_s29 = sshll.u32 %s1004_s28, 4  ;;  %s149_s29 = int_to_ptr.vmem [resolvable:$true] %s148_s29 }
  0x10   : > { %p598_p11 = scmp.ge.s32.totalorder %s1002_s17, 2  ;;  %s161_s5 = sshll.u32 %s1192_s2, 4  ;;  %s162_s5 = int_to_ptr.hbm [resolvable:$true] %s161_s5 }
  0x11   : > { %p749_p9 = pneg %p1089_p8  ;;  %s1005_s6 = smov 192  }
  0x12   : > { %s1006_s7 = smov 12   ;;  %s1007_s8 = smov [#allocation7]  }
  0x13   : > { %p750_p10 = pnand %p749_p9, %p1066_p1  ;;  %s163_s9 = sshll.u32 %s1007_s8, 4  ;;  %s164_s9 = int_to_ptr.vmem [resolvable:$true] %s163_s9 }
  0x14   : > { %s146_s26 = sshll.u32 %s1199_s1, 4  ;;  %s32_s10 = sadd.s32 1, %s998_s16  ;;  %s147_s26 = int_to_ptr.hbm [resolvable:$true] %s146_s26 }
  0x15   : > { %752 = dma.hbm_to_vmem [thread:$0]  (!%p750_p10), %s147_s26, 3072, %s149_s29, [#allocation6], %s1005_s6, %s1005_s6, %s1006_s7  }
  0x16   : > { %755 = dma.hbm_to_vmem [thread:$0]  (!%p750_p10), %s162_s5, 48, %s164_s9, [#allocation6]  }
  0x17   : > { %s41_s11 = sadd.s32 1, %s990_s14  ;;  %p34_p12 = scmp.ge.s32.totalorder %s32_s10, 2 }
  0x18   : > { %p48_p13 = scmp.ne.s32.totalorder %s990_s14, %s986_s13  ;;  %p49_p0 = scmp.eq.s32.totalorder %s1002_s17, 0 }
  0x19   : > { %p766_p3 = scmp.lt.s32.totalorder %s1002_s17, 2  ;;  %s1209_s10 = smov (%p34_p12, %s32_s10), 0 }
  0x1a   : > { %p1109_p5 = por %p49_p0, %p48_p13  ;;  %p1115_p7 = por %p1070_p2, %p48_p13 }
  0x1b   : > { %s36_s24 = ssub.s32 %s998_s16, %s1209_s10  ;;  %s174_s25 = sand.u32 1, %s990_s14  }
  0x1c   : > { %p39_p9 = scmp.eq.s32.totalorder %s36_s24, 0  ;;  %s599_s26 = sshll.u32 %s174_s25, 3 }
  0x1d   : > { %s709_s28 = sshll.u32 %s998_s16, 3  ;;  %s178_s7 = scalar_lea.vmem [#allocation2], %s599_s26 }
  0x1e   : > { %s1124_s29 = scalar_select %p39_p9, %s990_s14, %s41_s11  }
  0x1f   : > { %s185_s5 = scalar_lea.hbm %s1190_s0, %s709_s28  ;;  %s188_s8 = sshll.u32 %s178_s7, 4  ;;  %s189_s8 = int_to_ptr.vmem [resolvable:$true] %s188_s8 }
  0x20   : > { %s186_s6 = sshll.u32 %s185_s5, 4  ;;  %p757_p2 = pnand %p766_p3, %p1109_p5  ;;  %s187_s6 = int_to_ptr.hbm [resolvable:$true] %s186_s6 }
  0x21   : > { %s175_s21 = scalar_lea.sflag [#allocation3], %s174_s25  ;;  %s1008_s9 = smov 64  }
  0x22   : > { %s1009_s1 = smov 4   ;;  %200 = sbr.rel (%p1089_p8) target bundleno = 226 (0xe2), region = 32 }
  0x23   : > { %759 = dma.hbm_to_vmem [thread:$0]  (!%p757_p2), %s187_s6, 128, %s189_s8, %s175_s21, %s1008_s9, %s1008_s9, %s1009_s1  }
  0x24   : > { %s1136_s11 = sand.u32 (!%p1089_p8), 1, %s986_s13  }
  0x25   : > { %s603_s24 = sshll.u32 (!%p1089_p8), %s1136_s11, 3  ;;  %s203_s26 = scalar_lea.sflag (!%p1089_p8), [#allocation3], %s1136_s11 }
  0x26   : > { %s1140_s28 = scalar_lea.vmem (!%p1089_p8), [#allocation2], %s603_s24 }
  0x27   : > { %969 = dma.done.wait (%p1076_p4), %s203_s26, 128  }
  0x28   : > { %971 = vsyncadd (%p1076_p4), %s203_s26, 4294967168 }
  0x29   : > { %973 = dma.done.wait (%p1066_p1), [#allocation6], 3120  }
  0x2a   : > { %975 = vsyncadd (%p1066_p1), [#allocation6], 4294964176  ;;  %v696_v0 = vld [vmem:[#allocation5 + $0xa8] sm:$0xf]  ;;  %v733_v1 = vld [vmem:[#allocation5 + $0xb0] sm:$0xf0] }
  0x2b   : > { %v732_v2 = vld [vmem:[#allocation5 + $0xac] sm:$0xf]  ;;  %v697_v3 = vor.u32 %v733_v1, %v696_v0  ;;  %v698_v4 = vld [vmem:[#allocation5 + $0xb4] sm:$0xf0]  ;;  %v704_v5 = vld [vmem:[#allocation5 + $0xb0] sm:$0xf] }
  0x2c   : > { %v734_v6 = vld [vmem:[#allocation5 + $0xb8] sm:$0xf0]  ;;  %v701_v7 = vor.u32 %v732_v2, %v698_v4  ;;  %v684_v9 = vld [vmem:[#allocation5 + $0x90] sm:$0xf]  ;;  %v729_v11 = vld [vmem:[#allocation5 + $0x94] sm:$0xf] }
  0x2d   : > { %v705_v8 = vor.u32 %v734_v6, %v704_v5  ;;  %v730_v10 = vld [vmem:[#allocation5 + $0x98] sm:$0xf0]  ;;  %418 = vmatpush.bf16.msra.mxu0 %v697_v3  ;;  %v686_v13 = vld [vmem:[#allocation5 + $0x9c] sm:$0xf0]  ;;  %v692_v14 = vld [vmem:[#allocation5 + $0x98] sm:$0xf] }
  0x2e   : > { %v685_v12 = vor.u32 %v730_v10, %v684_v9  ;;  %v731_v15 = vld [vmem:[#allocation5 + $0xa0] sm:$0xf0]  ;;  %432 = vmatpush.bf16.msra.mxu1 %v701_v7  ;;  %v689_v16 = vor.u32 %v729_v11, %v686_v13  ;;  %v672_v18 = vld [vmem:[#allocation5 + $0x78] sm:$0xf]  ;;  %v726_v20 = vld [vmem:[#allocation5 + $0x7c] sm:$0xf] }
  0x2f   : > { %446 = vmatpush.bf16.msra.mxu2 %v705_v8  ;;  %v693_v17 = vor.u32 %v731_v15, %v692_v14  ;;  %v727_v19 = vld [vmem:[#allocation5 + $0x80] sm:$0xf0]  ;;  %v674_v21 = vld [vmem:[#allocation5 + $0x84] sm:$0xf0]  ;;  %v680_v22 = vld [vmem:[#allocation5 + $0x80] sm:$0xf] }
  0x30   : > { %v728_v23 = vld [vmem:[#allocation5 + $0x88] sm:$0xf0]  ;;  %v673_v24 = vor.u32 %v727_v19, %v672_v18  ;;  %v677_v25 = vor.u32 %v726_v20, %v674_v21  ;;  %v660_v27 = vld [vmem:[#allocation5 + $0x60] sm:$0xf]  ;;  %v723_v29 = vld [vmem:[#allocation5 + $0x64] sm:$0xf] }
  0x31   : > { %419 = vmatpush.bf16.msra.mxu0 %v685_v12  ;;  %v681_v26 = vor.u32 %v728_v23, %v680_v22  ;;  %v724_v28 = vld [vmem:[#allocation5 + $0x68] sm:$0xf0]  ;;  %v662_v30 = vld [vmem:[#allocation5 + $0x6c] sm:$0xf0]  ;;  %v668_v31 = vld [vmem:[#allocation5 + $0x68] sm:$0xf] }
  0x32   : > { %433 = vmatpush.bf16.msra.mxu1 %v689_v16  ;;  %v725_v32 = vld [vmem:[#allocation5 + $0x70] sm:$0xf0]  ;;  %v661_v33 = vor.u32 %v724_v28, %v660_v27  ;;  %v665_v34 = vor.u32 %v723_v29, %v662_v30  ;;  %v648_v36 = vld [vmem:[#allocation5 + $0x48] sm:$0xf]  ;;  %v720_v38 = vld [vmem:[#allocation5 + $0x4c] sm:$0xf] }
  0x33   : > { %447 = vmatpush.bf16.msra.mxu2 %v693_v17  ;;  %v669_v35 = vor.u32 %v725_v32, %v668_v31  ;;  %v721_v37 = vld [vmem:[#allocation5 + $0x50] sm:$0xf0]  ;;  %v650_v39 = vld [vmem:[#allocation5 + $0x54] sm:$0xf0]  ;;  %v656_v40 = vld [vmem:[#allocation5 + $0x50] sm:$0xf] }
  0x34   : > { %v722_v41 = vld [vmem:[#allocation5 + $0x58] sm:$0xf0]  ;;  %v649_v42 = vor.u32 %v721_v37, %v648_v36  ;;  %v653_v43 = vor.u32 %v720_v38, %v650_v39  ;;  %v636_v45 = vld [vmem:[#allocation5 + $0x30] sm:$0xf]  ;;  %v717_v47 = vld [vmem:[#allocation5 + $0x34] sm:$0xf] }
  0x35   : > { %420 = vmatpush.bf16.msra.mxu0 %v673_v24  ;;  %v657_v44 = vor.u32 %v722_v41, %v656_v40  ;;  %v718_v46 = vld [vmem:[#allocation5 + $0x38] sm:$0xf0]  ;;  %v638_v48 = vld [vmem:[#allocation5 + $0x3c] sm:$0xf0]  ;;  %v644_v49 = vld [vmem:[#allocation5 + $0x38] sm:$0xf] }
  0x36   : > { %434 = vmatpush.bf16.msra.mxu1 %v677_v25  ;;  %v719_v50 = vld [vmem:[#allocation5 + $0x40] sm:$0xf0]  ;;  %v637_v51 = vor.u32 %v718_v46, %v636_v45  ;;  %v641_v52 = vor.u32 %v717_v47, %v638_v48  ;;  %v624_v54 = vld [vmem:[#allocation5 + $0x18] sm:$0xf]  ;;  %v714_v56 = vld [vmem:[#allocation5 + $0x1c] sm:$0xf] }
  0x37   : > { %448 = vmatpush.bf16.msra.mxu2 %v681_v26  ;;  %v645_v53 = vor.u32 %v719_v50, %v644_v49  ;;  %v715_v55 = vld [vmem:[#allocation5 + $0x20] sm:$0xf0]  ;;  %v626_v57 = vld [vmem:[#allocation5 + $0x24] sm:$0xf0]  ;;  %v632_v58 = vld [vmem:[#allocation5 + $0x20] sm:$0xf] }
  0x38   : > { %v716_v59 = vld [vmem:[#allocation5 + $0x28] sm:$0xf0]  ;;  %v625_v60 = vor.u32 %v715_v55, %v624_v54  ;;  %v629_v61 = vor.u32 %v714_v56, %v626_v57  ;;  %v612_v63 = vld [vmem:[#allocation5] sm:$0xf]  ;;  %v711_v1 = vld [vmem:[#allocation5 + $0x4] sm:$0xf] }
  0x39   : > { %421 = vmatpush.bf16.msra.mxu0 %v661_v33  ;;  %v633_v62 = vor.u32 %v716_v59, %v632_v58  ;;  %v712_v0 = vld [vmem:[#allocation5 + $0x8] sm:$0xf0]  ;;  %v614_v2 = vld [vmem:[#allocation5 + $0xc] sm:$0xf0]  ;;  %v620_v3 = vld [vmem:[#allocation5 + $0x8] sm:$0xf] }
  0x3a   : > { %435 = vmatpush.bf16.msra.mxu1 %v665_v34  ;;  %v713_v4 = vld [vmem:[#allocation5 + $0x10] sm:$0xf0]  ;;  %v613_v5 = vor.u32 %v712_v0, %v612_v63  ;;  %v617_v6 = vor.u32 %v711_v1, %v614_v2  ;;  %v276_v9 = vld [vmem:[#allocation7] sm:$0x7]  ;;  %s735_s1 = smul.u32 24, %s1136_s11  ;;  %s936_s21 = scalar_lea.hbm %s1193_s3, 48 }
  0x3b   : > { %449 = vmatpush.bf16.msra.mxu2 %v669_v35  ;;  %v621_v7 = vor.u32 %v713_v4, %v620_v3  ;;  %v710_v8 = vld [vmem:[%s1140_s28] sm:$0xff]  ;;  %v278_v10 = vperm.slane %v276_v9, 0  ;;  %v279_v11 = vperm.slane %v276_v9, 1  ;;  %v280_v17 = vperm.slane %v276_v9, 2  ;;  %s736_s22 = smul.u32 24, %s994_s15  ;;  %s469_s15 = scalar_lea.sflag [#allocation4], %s1136_s11 }
  0x3c   : > { %s239_s20 = scalar_lea.vmem [#allocation8], %s735_s1 }
  0x3d   : > { %422 = vmatpush.bf16.msra.mxu0 %v649_v42  ;;  %s483_s25 = scalar_lea.hbm %s1193_s3, %s736_s22  ;;  %s484_s30 = sshll.u32 %s239_s20, 4  ;;  %s485_s30 = int_to_ptr.vmem [resolvable:$true] %s484_s30 }
  0x3e   : > { %436 = vmatpush.bf16.msra.mxu1 %v653_v43  ;;  %s486_s4 = sshll.u32 %s483_s25, 4  ;;  %s487_s4 = int_to_ptr.hbm [resolvable:$true] %s486_s4 }
  0x3f   : > { %450 = vmatpush.bf16.msra.mxu2 %v657_v44  ;;  %s930_s5 = sshra.s32 %s487_s4, 4  ;;  %s931_s5 = int_to_ptr.hbm [resolvable:$true] %s930_s5 }
  0x40   : > { %s932_s6 = scalar_lea.hbm %s931_s5, 24  ;;  %p937_p10 = scmp.lt.s32.totalorder %s931_s5, %s1193_s3 }
  0x41   : > { %423 = vmatpush.bf16.msra.mxu0 %v637_v51  ;;  %p933_p1 = scmp.ne.s32.totalorder %s931_s5, %s932_s6  ;;  %p938_p12 = scmp.lt.s32.totalorder %s936_s21, %s932_s6 }
  0x42   : > { %437 = vmatpush.bf16.msra.mxu1 %v641_v52 }
  0x43   : > { %451 = vmatpush.bf16.msra.mxu2 %v645_v53  ;;  %p934_p4 = pnand %p933_p1, %p1115_p7  ;;  %p939_p13 = por %p938_p12, %p937_p10 }
  0x45   : > { %424 = vmatpush.bf16.msra.mxu0 %v625_v60  ;;  %p935_p8 = pneg %p934_p4 }
  0x46   : > { %438 = vmatpush.bf16.msra.mxu1 %v629_v61 }
  0x47   : > { %452 = vmatpush.bf16.msra.mxu2 %v633_v62  ;;  %p940_p0 = pnand %p939_p13, %p935_p8 }
  0x49   : > { %425 = vmatpush.bf16.msra.mxu0 %v613_v5 }
  0x4a   : > { %439 = vmatpush.bf16.msra.mxu1 %v617_v6 }
  0x4b   : > { %453 = vmatpush.bf16.msra.mxu2 %v621_v7 }
  0x4c   : > { %426 = vmatmul.bf16.vlgmr.msra.gmra.mxu0 %v710_v8 }
  0x4d   : > { %440 = vmatmul.bf16.vlgmr.msra.gmra.mxu1 %v710_v8 }
  0x4e   : > { %454 = vmatmul.bf16.vlgmr.msra.gmra.mxu2 %v710_v8 }
  0xc9   : > { %v427_v12 = vpop.f32.mrf.mxu0 }
  0xca   : > { %v428_v13 = vadd.f32 %v427_v12, %v278_v10  ;;  %v441_v14 = vpop.f32.mrf.mxu1 }
  0xcb   : > { %v442_v15 = vadd.f32 %v441_v14, %v279_v11 }
  0xcd   : > { %v460_v16 = vpack.c.bf16 %v442_v15, %v428_v13 }
  0xcf   : > { %464 = vst [vmem:[%s239_s20] sm:$0xff] %v460_v16 }
  0xd1   : > { %v455_v18 = vpop.f32.mrf.mxu2  ;;  %v429_v20 = vpop.f32.mrf.mxu0 }
  0xd2   : > { %v456_v19 = vadd.f32 %v455_v18, %v280_v17  ;;  %v430_v21 = vadd.f32 %v429_v20, %v278_v10  ;;  %v443_v22 = vpop.f32.mrf.mxu1 }
  0xd3   : > { %v444_v24 = vadd.f32 %v443_v22, %v279_v11 }
  0xd4   : > { %v461_v23 = vpack.c.bf16 %v456_v19, %v456_v19 }
  0xd5   : > { %v462_v25 = vpack.c.bf16 %v444_v24, %v430_v21 }
  0xd6   : > { %465 = vst [vmem:[%s239_s20 + $0x8] sm:$0xf] %v461_v23 }
  0xd7   : > { %466 = vst [vmem:[%s239_s20 + $0xc] sm:$0xff] %v462_v25 }
  0xd9   : > { %v457_v26 = vpop.f32.mrf.mxu2 }
  0xda   : > { %v458_v27 = vadd.f32 %v457_v26, %v280_v17 }
  0xdc   : > { %v463_v28 = vpack.c.bf16 %v458_v27, %v458_v27 }
  0xde   : > { %467 = vst [vmem:[%s239_s20 + $0x14] sm:$0xf] %v463_v28 }
  0xdf   : > { %943 = shalt.err (!%p940_p0)
}
  0xe0   : > { %s1010_s11 = smov 192   ;;  %s1011_s26 = smov 12  }
  0xe1   : > { %747 = dma.vmem_to_hbm [thread:$0]  (%p1115_p7), %s485_s30, 384, %s487_s4, %s469_s15, %s1010_s11, %s1010_s11, %s1011_s26  }
  0xe2 PF: > { %s501_s28 = sand.u32 1, %s982_s12   ;;  %p761_p3 = pnand %p598_p11, %p1081_p6 }
  0xe3   : > { %s502_s1 = scalar_lea.sflag [#allocation4], %s501_s28 }
  0xe4   : > { %p762_p5 = pneg %p761_p3 }
  0xe6   : > { %977 = dma.done.wait (%p762_p5), %s502_s1, 384  }
  0xe7   : > { %979 = vsyncadd (%p762_p5), %s502_s1, 4294966912  ;;  %s20_s17 = sadd.s32 1, %s1002_s17   ;;  %s1203_s12 = smov %s986_s13 }
  0xe8   : > { %p17_p9 = scmp.ge.s32.totalorder %s20_s17, 4   ;;  %s1204_s13 = smov %s990_s14 }
  0xe9   : > { %s1205_s14 = smov %s1124_s29  ;;  %s1206_s15 = smov %s998_s16 }
  0xea   : > { %s1207_s16 = smov %s1209_s10  ;;  %19 = sbr.rel (!%p17_p9) target bundleno = 9 (0x9), region = 85 }
  0xef   :  { %508 = vsyncpa [#allocation3], 1 }
  0xf0   :  { %510 = vsyncpa [#allocation3 + $0x1], 1 }
  0xf1   :  { %511 = vsyncpa [#allocation6], 1 }
  0xf2   :  { %512 = vsyncpa [#allocation4], 1 }
  0xf3   :  { %514 = vsyncpa [#allocation4 + $0x1], 1 }

</bundles_post_ra>
